<compile_context>
chip_gen: v7x
topology: tpu7x:2x2x1
jax: 0.10.0
libtpu: 0.0.40
codegen_flags: <defaults>
</compile_context>

<pallas_src>
import functools

import jax
import jax.numpy as jnp
from jax import lax
from jax.experimental import pallas as pl
from jax.experimental.pallas import tpu as pltpu

BN_EPS = 1e-5


# --------------------------- shared per-tile building blocks ---------------------------
def _layer1(x_ref, w1_ref, b1_ref):
    x = x_ref[...].astype(jnp.float32)
    h = jnp.dot(x, w1_ref[...], preferred_element_type=jnp.float32) + b1_ref[...]
    return jax.nn.sigmoid(h)


def _double_bn(h, mu, var, gamma, beta):
    # Fused BN(BN(h)) with training-mode (biased) batch statistics.
    z = (h - mu) * lax.rsqrt(var + BN_EPS)
    g2 = gamma * gamma
    var_z = var / (var + BN_EPS)
    return g2 * z * lax.rsqrt(g2 * var_z + BN_EPS) + beta


def _tail(hbn, w2_ref, b2_ref, w3t_ref, b3):
    h2 = jnp.dot(hbn, w2_ref[...], preferred_element_type=jnp.float32) + b2_ref[...]
    h2 = jax.nn.sigmoid(h2)
    # Lane-dense final layer: contract (1,512) with (TILE,512) on dim 512 -> (1, TILE)
    y = lax.dot_general(w3t_ref[...], h2, (((1,), (1,)), ((), ())),
                        preferred_element_type=jnp.float32)
    return jax.nn.sigmoid(y + b3)


# ----------------------- fully fused kernel (batch in one tile) ------------------------
def fused_kernel(x_ref, w1_ref, b1_ref, g_ref, beta_ref, w2_ref, b2_ref,
                 w3t_ref, b3_ref, o_ref, *, inv_n):
    h = _layer1(x_ref, w1_ref, b1_ref)
    mu = jnp.sum(h, axis=0, keepdims=True) * inv_n
    var = jnp.maximum(jnp.sum(h * h, axis=0, keepdims=True) * inv_n - mu * mu, 0.0)
    hbn = _double_bn(h, mu, var, g_ref[...], beta_ref[...])
    o_ref[...] = _tail(hbn, w2_ref, b2_ref, w3t_ref, b3_ref[0, 0]).astype(o_ref.dtype)


# ------------- Pass 1 (tiled path): linear1 + sigmoid, accumulate BN stats -------------
def stats_kernel(x_ref, w1_ref, b1_ref, stats_ref):
    @pl.when(pl.program_id(0) == 0)
    def _():
        stats_ref[...] = jnp.zeros_like(stats_ref)

    h = _layer1(x_ref, w1_ref, b1_ref)
    s = jnp.sum(h, axis=0, keepdims=True)
    ss = jnp.sum(h * h, axis=0, keepdims=True)
    stats_ref[...] += jnp.concatenate([s, ss], axis=0)


# ---- Pass 2 (tiled path): recompute layer1, fused BN(BN(.)), MLP tail, lane-dense out ----
def tail_kernel(x_ref, w1_ref, b1_ref, stats_ref, g_ref, beta_ref,
                w2_ref, b2_ref, w3t_ref, b3_ref, o_ref, *, inv_n):
    h = _layer1(x_ref, w1_ref, b1_ref)
    mu = stats_ref[0:1, :] * inv_n
    var = jnp.maximum(stats_ref[1:2, :] * inv_n - mu * mu, 0.0)
    hbn = _double_bn(h, mu, var, g_ref[...], beta_ref[...])
    o_ref[...] = _tail(hbn, w2_ref, b2_ref, w3t_ref, b3_ref[0, 0]).astype(o_ref.dtype)


def _pick_tile(n):
    # Cap batch tile at 2048 rows (fits v7x 64 MiB VMEM comfortably); fall back to
    # the full batch when it is small / not a multiple of 128.
    for t in (2048, 1024, 512, 256, 128):
        if n % t == 0:
            return t
    return n


def model_forward(x, params):
    (w1, b1, gamma, beta, w2, b2, w3, b3) = params
    n, f_in = x.shape
    d1 = w1.shape[1]      # 64
    d2 = w2.shape[1]      # 512
    tile = _pick_tile(n)
    n_tiles = n // tile
    inv_n = 1.0 / float(n)

    w3t = w3.reshape(1, d2)      # (512,1) -> (1,512)
    b3s = b3.reshape(1, 1)

    # ---------------- Fast path: whole batch fits in one tile -> single fused call ----------------
    if n_tiles == 1:
        kernel = functools.partial(fused_kernel, inv_n=inv_n)
        y_t = pl.pallas_call(
            kernel,
            out_shape=jax.ShapeDtypeStruct((1, n), jnp.float32),
            grid=(1,),
            in_specs=[
                pl.BlockSpec((tile, f_in), lambda i: (0, 0)),                 # x
                pl.BlockSpec((f_in, d1), lambda i: (0, 0)),                   # w1
                pl.BlockSpec((1, d1), lambda i: (0, 0)),                      # b1
                pl.BlockSpec((1, d1), lambda i: (0, 0)),                      # gamma
                pl.BlockSpec((1, d1), lambda i: (0, 0)),                      # beta
                pl.BlockSpec((d1, d2), lambda i: (0, 0)),                     # w2
                pl.BlockSpec((1, d2), lambda i: (0, 0)),                      # b2
                pl.BlockSpec((1, d2), lambda i: (0, 0)),                      # w3^T
                pl.BlockSpec((1, 1), lambda i: (0, 0),
                             memory_space=pltpu.MemorySpace.SMEM),            # b3 scalar
            ],
            out_specs=pl.BlockSpec((1, tile), lambda i: (0, 0)),              # lane-dense
            compiler_params=pltpu.CompilerParams(
                dimension_semantics=("arbitrary",),
                vmem_limit_bytes=64 << 20),
            cost_estimate=pl.CostEstimate(
                flops=2 * n * (f_in * d1 + d1 * d2 + d2) + 16 * n * d1,
                transcendentals=n * (d1 + d2 + 1),
                bytes_accessed=4 * (n * f_in + n + f_in * d1 + d1 * d2
                                    + 4 * d1 + 2 * d2 + 1)),
        )(x, w1, b1, gamma, beta, w2, b2, w3t, b3s)
        return y_t.reshape(n, 1)

    # ---- Pass 1: [sum, sum_sq] over the whole batch (resident (2,64) accumulator). ----
    stats = pl.pallas_call(
        stats_kernel,
        out_shape=jax.ShapeDtypeStruct((2, d1), jnp.float32),
        grid=(n_tiles,),
        in_specs=[
            pl.BlockSpec((tile, f_in), lambda i: (i, 0)),
            pl.BlockSpec((f_in, d1), lambda i: (0, 0)),
            pl.BlockSpec((1, d1), lambda i: (0, 0)),
        ],
        out_specs=pl.BlockSpec((2, d1), lambda i: (0, 0)),                    # resident
        compiler_params=pltpu.CompilerParams(
            dimension_semantics=("arbitrary",),
            vmem_limit_bytes=64 << 20),
        cost_estimate=pl.CostEstimate(
            flops=2 * n * f_in * d1 + 4 * n * d1,
            transcendentals=n * d1,
            bytes_accessed=4 * (n * f_in + f_in * d1 + 3 * d1)),
    )(x, w1, b1)

    # ---- Pass 2: recompute layer1 (cheaper than HBM round-trip of (N,64) activations),
    #      fused double-BN, MLP tail, lane-dense (1, N) output, megacore-parallel. ----
    kernel2 = functools.partial(tail_kernel, inv_n=inv_n)
    y_t = pl.pallas_call(
        kernel2,
        out_shape=jax.ShapeDtypeStruct((1, n), jnp.float32),
        grid=(n_tiles,),
        in_specs=[
            pl.BlockSpec((tile, f_in), lambda i: (i, 0)),                     # x tile
            pl.BlockSpec((f_in, d1), lambda i: (0, 0)),                       # w1
            pl.BlockSpec((1, d1), lambda i: (0, 0)),                          # b1
            pl.BlockSpec((2, d1), lambda i: (0, 0)),                          # stats
            pl.BlockSpec((1, d1), lambda i: (0, 0)),                          # gamma
            pl.BlockSpec((1, d1), lambda i: (0, 0)),                          # beta
            pl.BlockSpec((d1, d2), lambda i: (0, 0)),                         # w2 (resident)
            pl.BlockSpec((1, d2), lambda i: (0, 0)),                          # b2
            pl.BlockSpec((1, d2), lambda i: (0, 0)),                          # w3^T
            pl.BlockSpec((1, 1), lambda i: (0, 0),
                         memory_space=pltpu.MemorySpace.SMEM),                # b3 scalar
        ],
        out_specs=pl.BlockSpec((1, tile), lambda i: (0, i)),                  # lane-dense
        compiler_params=pltpu.CompilerParams(
            dimension_semantics=("parallel",),
            vmem_limit_bytes=64 << 20),
        cost_estimate=pl.CostEstimate(
            flops=2 * n * (f_in * d1 + d1 * d2 + d2) + 12 * n * d1,
            transcendentals=n * (d1 + d2 + 1),
            bytes_accessed=4 * (n * f_in + n + f_in * d1 + d1 * d2
                                + 6 * d1 + 2 * d2 + 1)),
    )(x, w1, b1, stats, gamma, beta, w2, b2, w3t, b3s)

    return y_t.reshape(n, 1)


def init_params(key):
    # Deterministic synthetic init mirroring PyTorch Linear init ranges
    # (uniform(-1/sqrt(fan_in), +1/sqrt(fan_in))); BN gamma/beta perturbed so the
    # BatchNorm path is actually exercised.
    ks = jax.random.split(key, 8)

    def lin(kw, kb, fan_in, fan_out):
        bound = 1.0 / jnp.sqrt(jnp.float32(fan_in))
        w = jax.random.uniform(kw, (fan_in, fan_out), jnp.float32, -bound, bound)
        b = jax.random.uniform(kb, (1, fan_out), jnp.float32, -bound, bound)
        return w, b

    w1, b1 = lin(ks[0], ks[1], 23, 64)
    w2, b2 = lin(ks[2], ks[3], 64, 512)
    w3, b3 = lin(ks[4], ks[5], 512, 1)
    gamma = 1.0 + 0.1 * jax.random.normal(ks[6], (1, 64), jnp.float32)
    beta = 0.1 * jax.random.normal(ks[7], (1, 64), jnp.float32)
    return (w1, b1, gamma, beta, w2, b2, w3, b3)


def reference_forward(x, params):
    (w1, b1, gamma, beta, w2, b2, w3, b3) = params
    h = jax.nn.sigmoid(x @ w1 + b1)

    def bn(v):
        mu = jnp.mean(v, axis=0, keepdims=True)
        var = jnp.mean((v - mu) ** 2, axis=0, keepdims=True)
        return gamma * (v - mu) / jnp.sqrt(var + BN_EPS) + beta

    h = bn(bn(h))
    h = jax.nn.sigmoid(h @ w2 + b2)
    return jax.nn.sigmoid(h @ w3 + b3)


if __name__ == "__main__":
    key = jax.random.PRNGKey(0)
    k_x, k_p = jax.random.split(key)

    N, F_IN = 8, 23
    x = jax.random.normal(k_x, (N, F_IN), jnp.float32)
    params = init_params(k_p)

    out = model_forward(x, params)
    out = jax.block_until_ready(out)

    ref = reference_forward(x, params)
    assert out.shape == (N, 1)
    assert jnp.allclose(out, ref, atol=1e-5, rtol=1e-5)

    # Also exercise the tiled (two-pass) path with a batch that needs tiling.
    N2 = 256
    x2 = jax.random.normal(jax.random.PRNGKey(1), (N2, F_IN), jnp.float32)
    out2 = jax.block_until_ready(model_forward(x2, params))
    ref2 = reference_forward(x2, params)
    assert out2.shape == (N2, 1)
    assert jnp.allclose(out2, ref2, atol=1e-5, rtol=1e-5)

    print("KERNEL_OK")
</pallas_src>

<mosaic_0001>
module attributes {stable_mosaic.version = 11 : i64} {
  func.func @fused_kernel(%arg0: i32, %arg1: memref<8x23xf32, #tpu.memory_space<vmem>>, %arg2: memref<23x64xf32, #tpu.memory_space<vmem>>, %arg3: memref<1x64xf32, #tpu.memory_space<vmem>>, %arg4: memref<1x64xf32, #tpu.memory_space<vmem>>, %arg5: memref<1x64xf32, #tpu.memory_space<vmem>>, %arg6: memref<64x512xf32, #tpu.memory_space<vmem>>, %arg7: memref<1x512xf32, #tpu.memory_space<vmem>>, %arg8: memref<1x512xf32, #tpu.memory_space<vmem>>, %arg9: memref<1x1xf32, #tpu.memory_space<smem>>, %arg10: memref<1x8xf32, #tpu.memory_space<vmem>>) attributes {dimension_semantics = [#tpu.dimension_semantics<arbitrary>], iteration_bounds = array<i64: 1>, scalar_prefetch = 0 : i64, scratch_operands = 0 : i64, tpu.core_type = #tpu.core_type<tc>, window_params = [{pipeline_mode = #tpu.pipeline_mode<synchronous>, transform_indices = @transform_0, window_bounds = array<i64: 8, 23>}, {pipeline_mode = #tpu.pipeline_mode<synchronous>, transform_indices = @transform_1, window_bounds = array<i64: 23, 64>}, {pipeline_mode = #tpu.pipeline_mode<synchronous>, transform_indices = @transform_2, window_bounds = array<i64: 1, 64>}, {pipeline_mode = #tpu.pipeline_mode<synchronous>, transform_indices = @transform_3, window_bounds = array<i64: 1, 64>}, {pipeline_mode = #tpu.pipeline_mode<synchronous>, transform_indices = @transform_4, window_bounds = array<i64: 1, 64>}, {pipeline_mode = #tpu.pipeline_mode<synchronous>, transform_indices = @transform_5, window_bounds = array<i64: 64, 512>}, {pipeline_mode = #tpu.pipeline_mode<synchronous>, transform_indices = @transform_6, window_bounds = array<i64: 1, 512>}, {pipeline_mode = #tpu.pipeline_mode<synchronous>, transform_indices = @transform_7, window_bounds = array<i64: 1, 512>}, {transform_indices = @transform_8, window_bounds = array<i64: 1, 1>}, {pipeline_mode = #tpu.pipeline_mode<synchronous>, transform_indices = @transform_9, window_bounds = array<i64: 1, 8>}]} {
    %c0 = arith.constant 0 : index
    %c0_0 = arith.constant 0 : index
    %0 = vector.load %arg1[%c0, %c0_0] : memref<8x23xf32, #tpu.memory_space<vmem>>, vector<8x23xf32>
    %c0_1 = arith.constant 0 : index
    %c0_2 = arith.constant 0 : index
    %1 = vector.load %arg2[%c0_1, %c0_2] : memref<23x64xf32, #tpu.memory_space<vmem>>, vector<23x64xf32>
    %cst = arith.constant dense<0.000000e+00> : vector<8x64xf32>
    %2 = tpu.matmul %0, %1, %cst {dimension_numbers = #tpu.dot_dimension_numbers<[1], [0], [0], [1], [0, 0, 1, 1], [], []>} : vector<8x23xf32>, vector<23x64xf32>, vector<8x64xf32> -> vector<8x64xf32>
    %c0_3 = arith.constant 0 : index
    %c0_4 = arith.constant 0 : index
    %3 = vector.load %arg3[%c0_3, %c0_4] : memref<1x64xf32, #tpu.memory_space<vmem>>, vector<1x64xf32>
    %4 = vector.broadcast %3 : vector<1x64xf32> to vector<8x64xf32>
    %5 = arith.addf %2, %4 : vector<8x64xf32>
    %6 = arith.negf %5 : vector<8x64xf32>
    %7 = math.exp %6 : vector<8x64xf32>
    %cst_5 = arith.constant 1.000000e+00 : f32
    %8 = vector.broadcast %cst_5 : f32 to vector<8x64xf32>
    %9 = arith.addf %8, %7 : vector<8x64xf32>
    %10 = arith.divf %8, %9 : vector<8x64xf32>
    %cst_6 = arith.constant dense<0.000000e+00> : vector<64xf32>
    %11 = vector.multi_reduction <add>, %10, %cst_6 [0] : vector<8x64xf32> to vector<64xf32>
    %12 = vector.shape_cast %11 : vector<64xf32> to vector<1x64xf32>
    %cst_7 = arith.constant 1.250000e-01 : f32
    %13 = vector.broadcast %cst_7 : f32 to vector<1x64xf32>
    %14 = arith.mulf %12, %13 : vector<1x64xf32>
    %15 = arith.mulf %10, %10 : vector<8x64xf32>
    %cst_8 = arith.constant dense<0.000000e+00> : vector<64xf32>
    %16 = vector.multi_reduction <add>, %15, %cst_8 [0] : vector<8x64xf32> to vector<64xf32>
    %17 = vector.shape_cast %16 : vector<64xf32> to vector<1x64xf32>
    %cst_9 = arith.constant 1.250000e-01 : f32
    %18 = vector.broadcast %cst_9 : f32 to vector<1x64xf32>
    %19 = arith.mulf %17, %18 : vector<1x64xf32>
    %20 = arith.mulf %14, %14 : vector<1x64xf32>
    %21 = arith.subf %19, %20 : vector<1x64xf32>
    %cst_10 = arith.constant 0.000000e+00 : f32
    %22 = vector.broadcast %cst_10 : f32 to vector<1x64xf32>
    %23 = arith.maximumf %21, %22 : vector<1x64xf32>
    %c0_11 = arith.constant 0 : index
    %c0_12 = arith.constant 0 : index
    %24 = vector.load %arg4[%c0_11, %c0_12] : memref<1x64xf32, #tpu.memory_space<vmem>>, vector<1x64xf32>
    %c0_13 = arith.constant 0 : index
    %c0_14 = arith.constant 0 : index
    %25 = vector.load %arg5[%c0_13, %c0_14] : memref<1x64xf32, #tpu.memory_space<vmem>>, vector<1x64xf32>
    %26 = vector.broadcast %14 : vector<1x64xf32> to vector<8x64xf32>
    %27 = arith.subf %10, %26 : vector<8x64xf32>
    %cst_15 = arith.constant 9.99999974E-6 : f32
    %28 = vector.broadcast %cst_15 : f32 to vector<1x64xf32>
    %29 = arith.addf %23, %28 : vector<1x64xf32>
    %30 = math.rsqrt %29 : vector<1x64xf32>
    %31 = vector.broadcast %30 : vector<1x64xf32> to vector<8x64xf32>
    %32 = arith.mulf %27, %31 : vector<8x64xf32>
    %33 = arith.mulf %24, %24 : vector<1x64xf32>
    %cst_16 = arith.constant 9.99999974E-6 : f32
    %34 = vector.broadcast %cst_16 : f32 to vector<1x64xf32>
    %35 = arith.addf %23, %34 : vector<1x64xf32>
    %36 = arith.divf %23, %35 : vector<1x64xf32>
    %37 = vector.broadcast %33 : vector<1x64xf32> to vector<8x64xf32>
    %38 = arith.mulf %37, %32 : vector<8x64xf32>
    %39 = arith.mulf %33, %36 : vector<1x64xf32>
    %cst_17 = arith.constant 9.99999974E-6 : f32
    %40 = vector.broadcast %cst_17 : f32 to vector<1x64xf32>
    %41 = arith.addf %39, %40 : vector<1x64xf32>
    %42 = math.rsqrt %41 : vector<1x64xf32>
    %43 = vector.broadcast %42 : vector<1x64xf32> to vector<8x64xf32>
    %44 = arith.mulf %38, %43 : vector<8x64xf32>
    %45 = vector.broadcast %25 : vector<1x64xf32> to vector<8x64xf32>
    %46 = arith.addf %44, %45 : vector<8x64xf32>
    %c0_18 = arith.constant 0 : index
    %c0_19 = arith.constant 0 : index
    %47 = memref.load %arg9[%c0_18, %c0_19] : memref<1x1xf32, #tpu.memory_space<smem>>
    %c0_20 = arith.constant 0 : index
    %c0_21 = arith.constant 0 : index
    %48 = vector.load %arg6[%c0_20, %c0_21] : memref<64x512xf32, #tpu.memory_space<vmem>>, vector<64x512xf32>
    %cst_22 = arith.constant dense<0.000000e+00> : vector<8x512xf32>
    %49 = tpu.matmul %46, %48, %cst_22 {dimension_numbers = #tpu.dot_dimension_numbers<[1], [0], [0], [1], [0, 0, 1, 1], [], []>} : vector<8x64xf32>, vector<64x512xf32>, vector<8x512xf32> -> vector<8x512xf32>
    %c0_23 = arith.constant 0 : index
    %c0_24 = arith.constant 0 : index
    %50 = vector.load %arg7[%c0_23, %c0_24] : memref<1x512xf32, #tpu.memory_space<vmem>>, vector<1x512xf32>
    %51 = vector.broadcast %50 : vector<1x512xf32> to vector<8x512xf32>
    %52 = arith.addf %49, %51 : vector<8x512xf32>
    %53 = arith.negf %52 : vector<8x512xf32>
    %54 = math.exp %53 : vector<8x512xf32>
    %cst_25 = arith.constant 1.000000e+00 : f32
    %55 = vector.broadcast %cst_25 : f32 to vector<8x512xf32>
    %56 = arith.addf %55, %54 : vector<8x512xf32>
    %57 = arith.divf %55, %56 : vector<8x512xf32>
    %c0_26 = arith.constant 0 : index
    %c0_27 = arith.constant 0 : index
    %58 = vector.load %arg8[%c0_26, %c0_27] : memref<1x512xf32, #tpu.memory_space<vmem>>, vector<1x512xf32>
    %cst_28 = arith.constant dense<0.000000e+00> : vector<1x8xf32>
    %59 = tpu.matmul %58, %57, %cst_28 {dimension_numbers = #tpu.dot_dimension_numbers<[1], [1], [0], [0], [0, 0, 1, 0], [], []>} : vector<1x512xf32>, vector<8x512xf32>, vector<1x8xf32> -> vector<1x8xf32>
    %60 = vector.broadcast %47 : f32 to vector<1x8xf32>
    %61 = arith.addf %59, %60 : vector<1x8xf32>
    %62 = arith.negf %61 : vector<1x8xf32>
    %63 = math.exp %62 : vector<1x8xf32>
    %cst_29 = arith.constant 1.000000e+00 : f32
    %64 = vector.broadcast %cst_29 : f32 to vector<1x8xf32>
    %65 = arith.addf %64, %63 : vector<1x8xf32>
    %66 = arith.divf %64, %65 : vector<1x8xf32>
    %c0_30 = arith.constant 0 : index
    %c0_31 = arith.constant 0 : index
    %67 = vector.load %arg10[%c0_30, %c0_31] : memref<1x8xf32, #tpu.memory_space<vmem>>, vector<1x8xf32>
    tpu.vector_store %arg10[%c0_30, %c0_31], %66 {strides = array<i32>} : memref<1x8xf32, #tpu.memory_space<vmem>>, vector<1x8xf32>,
    return
  }
  func.func @transform_0(%arg0: i32) -> (i32, i32) {
    %c0_i32 = arith.constant 0 : i32
    %c0_i32_0 = arith.constant 0 : i32
    %c0_i32_1 = arith.constant 0 : i32
    return %c0_i32, %c0_i32_0 : i32, i32
  }
  func.func @transform_1(%arg0: i32) -> (i32, i32) {
    %c0_i32 = arith.constant 0 : i32
    %c0_i32_0 = arith.constant 0 : i32
    %c0_i32_1 = arith.constant 0 : i32
    return %c0_i32, %c0_i32_0 : i32, i32
  }
  func.func @transform_2(%arg0: i32) -> (i32, i32) {
    %c0_i32 = arith.constant 0 : i32
    %c0_i32_0 = arith.constant 0 : i32
    %c0_i32_1 = arith.constant 0 : i32
    return %c0_i32, %c0_i32_0 : i32, i32
  }
  func.func @transform_3(%arg0: i32) -> (i32, i32) {
    %c0_i32 = arith.constant 0 : i32
    %c0_i32_0 = arith.constant 0 : i32
    %c0_i32_1 = arith.constant 0 : i32
    return %c0_i32, %c0_i32_0 : i32, i32
  }
  func.func @transform_4(%arg0: i32) -> (i32, i32) {
    %c0_i32 = arith.constant 0 : i32
    %c0_i32_0 = arith.constant 0 : i32
    %c0_i32_1 = arith.constant 0 : i32
    return %c0_i32, %c0_i32_0 : i32, i32
  }
  func.func @transform_5(%arg0: i32) -> (i32, i32) {
    %c0_i32 = arith.constant 0 : i32
    %c0_i32_0 = arith.constant 0 : i32
    %c0_i32_1 = arith.constant 0 : i32
    return %c0_i32, %c0_i32_0 : i32, i32
  }
  func.func @transform_6(%arg0: i32) -> (i32, i32) {
    %c0_i32 = arith.constant 0 : i32
    %c0_i32_0 = arith.constant 0 : i32
    %c0_i32_1 = arith.constant 0 : i32
    return %c0_i32, %c0_i32_0 : i32, i32
  }
  func.func @transform_7(%arg0: i32) -> (i32, i32) {
    %c0_i32 = arith.constant 0 : i32
    %c0_i32_0 = arith.constant 0 : i32
    %c0_i32_1 = arith.constant 0 : i32
    return %c0_i32, %c0_i32_0 : i32, i32
  }
  func.func @transform_8(%arg0: i32) -> (i32, i32) {
    %c0_i32 = arith.constant 0 : i32
    %c0_i32_0 = arith.constant 0 : i32
    %c0_i32_1 = arith.constant 0 : i32
    return %c0_i32, %c0_i32_0 : i32, i32
  }
  func.func @transform_9(%arg0: i32) -> (i32, i32) {
    %c0_i32 = arith.constant 0 : i32
    %c0_i32_0 = arith.constant 0 : i32
    %c0_i32_1 = arith.constant 0 : i32
    return %c0_i32, %c0_i32_0 : i32, i32
  }
}

</mosaic_0001>

<bundles_post_ra>
// kernel: tpu_custom_call.1
= control target key start
LH: loop header
LB: loop body
LE: loop exit
PB: predicated region body
PF: predicated region fallthrough
CT: control target
= control target key end

     0   :  { %15 = vsyncpa [#allocation4], 0  ;;  %s1200_s0 = inlined_call_operand.hbm [shape: f32[8,23], index: 0, kind: input, shape index: {}]   ;;  %s1201_s1 = inlined_call_operand.hbm [shape: f32[23,64], index: 1, kind: input, shape index: {}]   ;;  %s1202_s2 = inlined_call_operand.hbm [shape: f32[1,64], index: 2, kind: input, shape index: {}]   ;;  %s1203_s3 = inlined_call_operand.hbm [shape: f32[1,64], index: 3, kind: input, shape index: {}]   ;;  %s1204_s4 = inlined_call_operand.hbm [shape: f32[1,64], index: 4, kind: input, shape index: {}]   ;;  %s1205_s5 = inlined_call_operand.hbm [shape: f32[64,512], index: 5, kind: input, shape index: {}]   ;;  %s1206_s6 = inlined_call_operand.hbm [shape: f32[1,512], index: 6, kind: input, shape index: {}]   ;;  %s1207_s7 = inlined_call_operand.hbm [shape: f32[1,512], index: 7, kind: input, shape index: {}]   ;;  %s1208_s8 = inlined_call_operand.<no memory space> [shape: f32[1,1], index: 8, kind: input, shape index: {}]   ;;  %s1209_s9 = inlined_call_operand.hbm [shape: f32[1,8], index: 9, kind: output, shape index: {}]  }
   0x1   :  { %16 = vsyncpa [#allocation7], 0 }
   0x2   :  { %17 = vsyncpa [#allocation10], 0 }
   0x3   :  { %18 = vsyncpa [#allocation13], 0 }
   0x4   :  { %19 = vsyncpa [#allocation16], 0 }
   0x5   :  { %20 = vsyncpa [#allocation5], 0  ;;  %s1013_s30 = smov [#allocation6]   ;;  %s803_s13 = scalar_lea.hbm %s1201_s1, 384 }
   0x6   :  { %s36_s10 = sshll.u32 %s1013_s30, 4  ;;  %p804_p0 = scmp.ne.s32.totalorder %s1201_s1, %s803_s13  ;;  %s37_s10 = int_to_ptr.vmem [resolvable:$true] %s36_s10 }
   0x7   :  { %p807_p1 = scmp.lt.u32.totalorder %s803_s13, %s1201_s1 }
   0x9   :  { %p809_p2 = pnand %p807_p1, %p804_p0 }
   0xb   :  { %812 = shalt.err (!%p809_p2)
}
   0xc   :  { %s813_s18 = scalar_lea.vmem %s37_s10, 384  ;;  %p818_p4 = scmp.lt.s32.totalorder %s37_s10, %s37_s10 }
   0xd   :  { %p814_p3 = scmp.ne.s32.totalorder %s37_s10, %s813_s18  ;;  %p819_p5 = scmp.lt.s32.totalorder %s813_s18, %s813_s18 }
   0xf   :  { %p820_p6 = por %p819_p5, %p818_p4 }
  0x11   :  { %p821_p7 = pnand %p820_p6, %p814_p3 }
  0x13   :  { %824 = shalt.err (!%p821_p7)
}
  0x14   :  { %s1014_s19 = smov 128   ;;  %s1015_s20 = smov 8  }
  0x15   :  { %42 = dma.hbm_to_vmem [thread:$0]  %s1201_s1, 384, %s37_s10, [#allocation7], %s1014_s19, %s1014_s19, %s1015_s20  }
  0x16   :  { %s1016_s23 = smov [#allocation9]   ;;  %s1017_s25 = smov [#allocation12]  }
  0x17   :  { %s59_s24 = sshll.u32 %s1016_s23, 4  ;;  %s78_s26 = sshll.u32 %s1017_s25, 4  ;;  %s60_s24 = int_to_ptr.vmem [resolvable:$true] %s59_s24  ;;  %s79_s26 = int_to_ptr.vmem [resolvable:$true] %s78_s26 }
  0x18   :  { %s825_s29 = scalar_lea.hbm %s1203_s3, 16 }
  0x19   :  { %p826_p8 = scmp.ne.s32.totalorder %s1203_s3, %s825_s29  ;;  %p829_p9 = scmp.lt.u32.totalorder %s825_s29, %s1203_s3 }
  0x1b   :  { %p831_p10 = pnand %p829_p9, %p826_p8 }
  0x1d   :  { %834 = shalt.err (!%p831_p10)
}
  0x1e   :  { %s835_s1 = scalar_lea.vmem %s60_s24, 16  ;;  %s839_s10 = scalar_lea.vmem %s60_s24, 32 }
  0x1f   :  { %p836_p11 = scmp.ne.s32.totalorder %s60_s24, %s835_s1  ;;  %p840_p12 = scmp.lt.s32.totalorder %s60_s24, %s60_s24 }
  0x20   :  { %p841_p13 = scmp.lt.s32.totalorder %s839_s10, %s835_s1 }
  0x22   :  { %p842_p0 = por %p841_p13, %p840_p12 }
  0x24   :  { %p843_p1 = pnand %p842_p0, %p836_p11 }
  0x26   :  { %846 = shalt.err (!%p843_p1)
}
  0x27   :  { %62 = dma.hbm_to_vmem [thread:$0]  %s1203_s3, 16, %s60_s24, [#allocation10]  }
  0x28   :  { %s847_s18 = scalar_lea.hbm %s1205_s5, 4096 }
  0x29   :  { %p848_p2 = scmp.ne.s32.totalorder %s1205_s5, %s847_s18  ;;  %p851_p3 = scmp.lt.u32.totalorder %s847_s18, %s1205_s5 }
  0x2b   :  { %p853_p4 = pnand %p851_p3, %p848_p2 }
  0x2d   :  { %856 = shalt.err (!%p853_p4)
}
  0x2e   :  { %s857_s23 = scalar_lea.vmem %s79_s26, 4096  ;;  %p862_p6 = scmp.lt.s32.totalorder %s79_s26, %s79_s26 }
  0x2f   :  { %p858_p5 = scmp.ne.s32.totalorder %s79_s26, %s857_s23  ;;  %p863_p7 = scmp.lt.s32.totalorder %s857_s23, %s857_s23 }
  0x31   :  { %p864_p8 = por %p863_p7, %p862_p6 }
  0x33   :  { %p865_p9 = pnand %p864_p8, %p858_p5 }
  0x35   :  { %868 = shalt.err (!%p865_p9)
}
  0x36   :  { %s1018_s3 = smov 512   ;;  %s1019_s24 = smov 32  }
  0x37   :  { %84 = dma.hbm_to_vmem [thread:$0]  %s1205_s5, 4096, %s79_s26, [#allocation13], %s1018_s3, %s1018_s3, %s1019_s24  }
  0x38   :  { %s1020_s28 = smov [#allocation3]   ;;  %s1021_s30 = smov [#allocation8]  }
  0x39   :  { %s27_s29 = sshll.u32 %s1020_s28, 4  ;;  %s49_s11 = sshll.u32 %s1021_s30, 4  ;;  %s28_s29 = int_to_ptr.vmem [resolvable:$true] %s27_s29  ;;  %s50_s11 = int_to_ptr.vmem [resolvable:$true] %s49_s11 }
  0x3a   :  { %s869_s1 = scalar_lea.hbm %s1200_s0, 128 }
  0x3b   :  { %p870_p10 = scmp.ne.s32.totalorder %s1200_s0, %s869_s1  ;;  %p873_p11 = scmp.lt.u32.totalorder %s869_s1, %s1200_s0 }
  0x3d   :  { %p875_p12 = pnand %p873_p11, %p870_p10 }
  0x3f   :  { %878 = shalt.err (!%p875_p12)
}
  0x40   :  { %s879_s5 = scalar_lea.vmem %s28_s29, 128  ;;  %p884_p0 = scmp.lt.s32.totalorder %s28_s29, %s28_s29 }
  0x41   :  { %p880_p13 = scmp.ne.s32.totalorder %s28_s29, %s879_s5  ;;  %p885_p1 = scmp.lt.s32.totalorder %s879_s5, %s879_s5 }
  0x43   :  { %p886_p2 = por %p885_p1, %p884_p0 }
  0x45   :  { %p887_p3 = pnand %p886_p2, %p880_p13 }
  0x47   :  { %890 = shalt.err (!%p887_p3)
}
  0x48   :  { %30 = dma.hbm_to_vmem [thread:$0]  %s1200_s0, 128, %s28_s29, [#allocation4]  }
  0x49   :  { %s891_s20 = scalar_lea.hbm %s1202_s2, 16 }
  0x4a   :  { %p892_p4 = scmp.ne.s32.totalorder %s1202_s2, %s891_s20  ;;  %p895_p5 = scmp.lt.u32.totalorder %s891_s20, %s1202_s2 }
  0x4c   :  { %p897_p6 = pnand %p895_p5, %p892_p4 }
  0x4e   :  { %900 = shalt.err (!%p897_p6)
}
  0x4f   :  { %s901_s24 = scalar_lea.vmem %s50_s11, 16  ;;  %s905_s25 = scalar_lea.vmem %s50_s11, 32 }
  0x50   :  { %p902_p7 = scmp.ne.s32.totalorder %s50_s11, %s901_s24  ;;  %p906_p8 = scmp.lt.s32.totalorder %s50_s11, %s50_s11 }
  0x51   :  { %p907_p9 = scmp.lt.s32.totalorder %s905_s25, %s901_s24 }
  0x53   :  { %p908_p10 = por %p907_p9, %p906_p8 }
  0x55   :  { %p909_p11 = pnand %p908_p10, %p902_p7 }
  0x57   :  { %912 = shalt.err (!%p909_p11)
}
  0x58   :  { %52 = dma.hbm_to_vmem [thread:$0]  %s1202_s2, 16, %s50_s11, [#allocation7]  }
  0x59   :  { %s1022_s28 = smov [#allocation11]   ;;  %s1023_s30 = smov [#allocation14]  }
  0x5a   :  { %s69_s29 = sshll.u32 %s1022_s28, 4  ;;  %s91_s12 = sshll.u32 %s1023_s30, 4  ;;  %s70_s29 = int_to_ptr.vmem [resolvable:$true] %s69_s29  ;;  %s92_s12 = int_to_ptr.vmem [resolvable:$true] %s91_s12 }
  0x5b   :  { %s913_s10 = scalar_lea.hbm %s1204_s4, 16 }
  0x5c   :  { %p914_p12 = scmp.ne.s32.totalorder %s1204_s4, %s913_s10  ;;  %p917_p13 = scmp.lt.u32.totalorder %s913_s10, %s1204_s4 }
  0x5e   :  { %p919_p0 = pnand %p917_p13, %p914_p12 }
  0x60   :  { %922 = shalt.err (!%p919_p0)
}
  0x61   :  { %s923_s2 = scalar_lea.vmem %s70_s29, 16  ;;  %s927_s11 = scalar_lea.vmem %s70_s29, 32 }
  0x62   :  { %p924_p1 = scmp.ne.s32.totalorder %s70_s29, %s923_s2  ;;  %p928_p2 = scmp.lt.s32.totalorder %s70_s29, %s70_s29 }
  0x63   :  { %p929_p3 = scmp.lt.s32.totalorder %s927_s11, %s923_s2 }
  0x65   :  { %p930_p4 = por %p929_p3, %p928_p2 }
  0x67   :  { %p931_p5 = pnand %p930_p4, %p924_p1 }
  0x69   :  { %934 = shalt.err (!%p931_p5)
}
  0x6a   :  { %72 = dma.hbm_to_vmem [thread:$0]  %s1204_s4, 16, %s70_s29, [#allocation10]  }
  0x6b   :  { %s935_s20 = scalar_lea.hbm %s1206_s6, 64 }
  0x6c   :  { %p936_p6 = scmp.ne.s32.totalorder %s1206_s6, %s935_s20  ;;  %p939_p7 = scmp.lt.u32.totalorder %s935_s20, %s1206_s6 }
  0x6e   :  { %p941_p8 = pnand %p939_p7, %p936_p6 }
  0x70   :  { %944 = shalt.err (!%p941_p8)
}
  0x71   :  { %s945_s24 = scalar_lea.vmem %s92_s12, 64  ;;  %p950_p10 = scmp.lt.s32.totalorder %s92_s12, %s92_s12 }
  0x72   :  { %p946_p9 = scmp.ne.s32.totalorder %s92_s12, %s945_s24  ;;  %p951_p11 = scmp.lt.s32.totalorder %s945_s24, %s945_s24 }
  0x74   :  { %p952_p12 = por %p951_p11, %p950_p10 }
  0x76   :  { %p953_p13 = pnand %p952_p12, %p946_p9 }
  0x78   :  { %956 = shalt.err (!%p953_p13)
}
  0x79   :  { %94 = dma.hbm_to_vmem [thread:$0]  %s1206_s6, 64, %s92_s12, [#allocation13]  }
  0x7a   :  { %s1024_s0 = smov [#allocation15]   ;;  %s957_s30 = scalar_lea.hbm %s1207_s7, 64 }
  0x7b   :  { %s101_s27 = sshll.u32 %s1024_s0, 4  ;;  %p958_p0 = scmp.ne.s32.totalorder %s1207_s7, %s957_s30  ;;  %s102_s27 = int_to_ptr.vmem [resolvable:$true] %s101_s27 }
  0x7c   :  { %p961_p1 = scmp.lt.u32.totalorder %s957_s30, %s1207_s7 }
  0x7e   :  { %p963_p2 = pnand %p961_p1, %p958_p0 }
  0x80   :  { %966 = shalt.err (!%p963_p2)
}
  0x81   :  { %s967_s15 = scalar_lea.vmem %s102_s27, 64  ;;  %p972_p4 = scmp.lt.s32.totalorder %s102_s27, %s102_s27 }
  0x82   :  { %p968_p3 = scmp.ne.s32.totalorder %s102_s27, %s967_s15  ;;  %p973_p5 = scmp.lt.s32.totalorder %s967_s15, %s967_s15 }
  0x84   :  { %p974_p6 = por %p973_p5, %p972_p4 }
  0x86   :  { %p975_p7 = pnand %p974_p6, %p968_p3 }
  0x88   :  { %978 = shalt.err (!%p975_p7)
}
  0x89   :  { %104 = dma.hbm_to_vmem [thread:$0]  %s1207_s7, 64, %s102_s27, [#allocation16]  }
  0x8a   :  { %1001 = dma.done.wait [#allocation4], 128  }
  0x8b   :  { %1002 = vsyncadd [#allocation4], 4294967168 }
  0x8c   :  { %1003 = dma.done.wait [#allocation7], 400  }
  0x8d   :  { %1004 = vsyncadd [#allocation7], 4294966896 }
  0x8e   :  { %1005 = dma.done.wait [#allocation10], 32  }
  0x8f   :  { %1006 = vsyncadd [#allocation10], 4294967264 }
  0x90   :  { %1007 = dma.done.wait [#allocation13], 4160  }
  0x91   :  { %1008 = vsyncadd [#allocation13], 4294963136 }
  0x92   :  { %1009 = dma.done.wait [#allocation16], 64  }
  0x93   :  { %1010 = vsyncadd [#allocation16], 4294967232  ;;  %v1025_v0 = vmov 0.0|0.0   ;;  %vm1026_vm0 = vmmov 0   ;;  %v1027_v1 = vmov 0.0   ;;  %v132_v2 = vld [vmem:[#allocation6] sm:$0xff] }
  0x94   :  { %719 = vmatprep.subr.bf16.mxu0 %v1025_v0  ;;  %716 = vmatprep.mubr.msk.f32.mxu0 %vm1026_vm0, %v1027_v1  ;;  %v133_v3 = vld [vmem:[#allocation6 + $0x8] sm:$0xff]  ;;  %v134_v5 = vld [vmem:[#allocation6 + $0x10] sm:$0x7f]  ;;  %vm146_vm1 = vcmask 1046528   ;;  %v131_v6 = vld [vmem:[#allocation3] sm:$0xff]  ;;  %vm142_vm2 = vcmask 187392  }
  0x95   :  { %402 = vmatprep.mubr.f32.mxu1 %v1027_v1  ;;  %v720_v4 = vpack.c.bf16 %v133_v3, %v132_v2  ;;  %v282_v7 = vld [vmem:[#allocation12 + $0x8] sm:$0xff]  ;;  %v284_v9 = vld [vmem:[#allocation12 + $0x18] sm:$0xff]  ;;  %v281_v12 = vld [vmem:[#allocation12] sm:$0xff]  ;;  %vm226_vm3 = vcmask 523264   ;;  %s1028_s5 = smov [#allocation17]   ;;  %vm673_vm4 = vcmask 57344  }
  0x96   :  { %v286_v8 = vld [vmem:[#allocation12 + $0x28] sm:$0xff]  ;;  %v288_v11 = vld [vmem:[#allocation12 + $0x38] sm:$0xff]  ;;  %v285_v13 = vld [vmem:[#allocation12 + $0x20] sm:$0xff]  ;;  %s681_s2 = sshll.u32 %s1028_s5, 4  ;;  %s682_s2 = int_to_ptr.vmem [resolvable:$true] %s681_s2 }
  0x97   :  { %721 = vmatpush3.bf16.msra.mxu0 %v720_v4  ;;  %v722_v10 = vpack.c.bf16 %v286_v8, %v282_v7  ;;  %v738_v14 = vpack.c.bf16 %v288_v11, %v284_v9  ;;  %v724_v15 = vpack.c.bf16 %v285_v13, %v281_v12  ;;  %v283_v16 = vld [vmem:[#allocation12 + $0x10] sm:$0xff]  ;;  %v290_v18 = vld [vmem:[#allocation12 + $0x48] sm:$0xff]  ;;  %v292_v21 = vld [vmem:[#allocation12 + $0x58] sm:$0xff]  ;;  %s979_s11 = scalar_lea.vmem %s682_s2, 16  ;;  %s983_s26 = scalar_lea.vmem %s682_s2, 32 }
  0x98   :  { %714 = vmatprep.subr.mxu0 %v1027_v1  ;;  %v287_v17 = vld [vmem:[#allocation12 + $0x30] sm:$0xff]  ;;  %v294_v20 = vld [vmem:[#allocation12 + $0x68] sm:$0xff]  ;;  %v296_v22 = vld [vmem:[#allocation12 + $0x78] sm:$0xff]  ;;  %p980_p8 = scmp.ne.s32.totalorder %s682_s2, %s979_s11  ;;  %p984_p9 = scmp.lt.s32.totalorder %s682_s2, %s682_s2 }
  0x99   :  { %723 = vmatprep.subr.bf16.mxu1 %v722_v10  ;;  %v740_v19 = vpack.c.bf16 %v287_v17, %v283_v16  ;;  %v726_v23 = vpack.c.bf16 %v294_v20, %v290_v18  ;;  %v742_v24 = vpack.c.bf16 %v296_v22, %v292_v21  ;;  %v289_v25 = vld [vmem:[#allocation12 + $0x40] sm:$0xff]  ;;  %v291_v27 = vld [vmem:[#allocation12 + $0x50] sm:$0xff]  ;;  %v298_v30 = vld [vmem:[#allocation12 + $0x88] sm:$0xff]  ;;  %p985_p10 = scmp.lt.s32.totalorder %s983_s26, %s979_s11 }
  0x9a   :  { %725 = vmatpush1.bf16.msra.mxu1 %v724_v15  ;;  %v293_v26 = vld [vmem:[#allocation12 + $0x60] sm:$0xff]  ;;  %v295_v29 = vld [vmem:[#allocation12 + $0x70] sm:$0xff]  ;;  %v302_v31 = vld [vmem:[#allocation12 + $0xa8] sm:$0xff] }
  0x9b   :  { %715 = vmatpush3.msk.msra.mxu0 %vm146_vm1, %v134_v5  ;;  %v728_v28 = vpack.c.bf16 %v293_v26, %v289_v25  ;;  %727 = vmatprep.subr.bf16.mxu1 %v726_v23  ;;  %v744_v32 = vpack.c.bf16 %v295_v29, %v291_v27  ;;  %v730_v33 = vpack.c.bf16 %v302_v31, %v298_v30  ;;  %v300_v34 = vld [vmem:[#allocation12 + $0x98] sm:$0xff]  ;;  %v297_v36 = vld [vmem:[#allocation12 + $0x80] sm:$0xff]  ;;  %v299_v39 = vld [vmem:[#allocation12 + $0x90] sm:$0xff]  ;;  %p986_p11 = por %p985_p10, %p984_p9 }
  0x9c   :  { %717 = vmatmul.mubr.msk.f32.vlgmr.msra.gmra.mrb[0].mxu0 %vm142_vm2, %v131_v6  ;;  %739 = vmatprep.subr.bf16.mxu0 %v738_v14  ;;  %v304_v35 = vld [vmem:[#allocation12 + $0xb8] sm:$0xff]  ;;  %v301_v38 = vld [vmem:[#allocation12 + $0xa0] sm:$0xff]  ;;  %v303_v40 = vld [vmem:[#allocation12 + $0xb0] sm:$0xff] }
  0x9d   :  { %473 = vmatprep.mubr.f32.mxu0 %v1027_v1  ;;  %741 = vmatpush1.bf16.msra.mxu0 %v740_v19  ;;  %v746_v37 = vpack.c.bf16 %v304_v35, %v300_v34  ;;  %v732_v41 = vpack.c.bf16 %v301_v38, %v297_v36  ;;  %v306_v42 = vld [vmem:[#allocation12 + $0xc8] sm:$0xff]  ;;  %v308_v44 = vld [vmem:[#allocation12 + $0xd8] sm:$0xff]  ;;  %v748_v45 = vpack.c.bf16 %v303_v40, %v299_v39  ;;  %v305_v48 = vld [vmem:[#allocation12 + $0xc0] sm:$0xff]  ;;  %p987_p12 = pnand %p986_p11, %p980_p8 }
  0x9e   :  { %743 = vmatprep.subr.bf16.mxu0 %v742_v24  ;;  %729 = vmatpush1.bf16.msra.mxu1 %v728_v28  ;;  %v310_v43 = vld [vmem:[#allocation12 + $0xe8] sm:$0xff]  ;;  %v312_v47 = vld [vmem:[#allocation12 + $0xf8] sm:$0xff]  ;;  %v309_v49 = vld [vmem:[#allocation12 + $0xe0] sm:$0xff]  ;;  %v257_v24 = vlaneseq }
  0x9f   :  { %731 = vmatprep.subr.bf16.mxu1 %v730_v33  ;;  %v734_v46 = vpack.c.bf16 %v310_v43, %v306_v42  ;;  %v750_v50 = vpack.c.bf16 %v312_v47, %v308_v44  ;;  %v307_v51 = vld [vmem:[#allocation12 + $0xd0] sm:$0xff]  ;;  %v736_v53 = vpack.c.bf16 %v309_v49, %v305_v48  ;;  %v694_v55 = vld [vmem:[#allocation8] ss:$0 sm:$0xff]  ;;  %v247_v20 = vld [vmem:[#allocation9] sm:$0x1] }
  0xa0   :  { %v311_v52 = vld [vmem:[#allocation12 + $0xf0] sm:$0xff]  ;;  %v253_v22 = vmul.f32 %v247_v20, %v247_v20  ;;  %v1177_v27 = vshrl.u32 %v257_v24, 7  ;;  %v698_v36 = vld [vmem:[#allocation11] ss:$0 sm:$0xff]  ;;  %v504_v39 = vld [vmem:[#allocation15] sm:$0xf] }
  0xa1   :  { %745 = vmatpush1.bf16.msra.mxu0 %v744_v32  ;;  %v752_v54 = vpack.c.bf16 %v311_v52, %v307_v51  ;;  %v313_v43 = vld [vmem:[#allocation14] sm:$0xf] }
  0xa2   :  { %747 = vmatprep.subr.bf16.mxu0 %v746_v37  ;;  %733 = vmatpush1.bf16.msra.mxu1 %v732_v41  ;;  %v259_v28 = vsub.s32 0, %v1177_v27  ;;  %v321_v40 = vsub.s32 1, %v1177_v27  ;;  %v325_v42 = vsub.s32 2, %v1177_v27  ;;  %v329_v44 = vsub.s32 3, %v1177_v27 }
  0xa3   :  { %735 = vmatprep.subr.bf16.mxu1 %v734_v46 }
  0xa4   :  { %v260_v32 = vrot.slane %v253_v22, %v259_v28  ;;  %v514_v41 = vrot.slane %v504_v39, %v321_v40  ;;  %v326_v46 = vrot.slane %v313_v43, %v325_v42  ;;  %v322_v47 = vrot.slane %v313_v43, %v321_v40 }
  0xa5   :  { %749 = vmatpush1.bf16.msra.mxu0 %v748_v45  ;;  %v318_v45 = vrot.slane %v313_v43, %v259_v28  ;;  %v330_v48 = vrot.slane %v313_v43, %v329_v44 }
  0xa6   :  { %751 = vmatprep.subr.bf16.mxu0 %v750_v50  ;;  %737 = vmatpush1.bf16.msra.mxu1 %v736_v53 }
  0xa9   :  { %753 = vmatpush1.bf16.msra.mxu0 %v752_v54 }
 0x16f   :  { %v216_v56 = vpop.f32.mrb[0].mxu0 }
 0x170   :  { %v217_v57 = vadd.f32 %v694_v55, %v216_v56  ;;  %v718_v58 = vpop.f32.mrb[1].mxu0 }
 0x172   :  { %v697_v59 = vmul.f32 -1.442695, %v217_v57 }
 0x174   :  { %773 = vpow2.f32 %v697_v59 }
 0x17e   :  { %v774_v60 = vpop.eup %773 }
 0x17f   :  { %v223_v61 = vadd.f32 1.0, %v774_v60 }
 0x181   :  { %775 = vrcp.f32 %v223_v61 }
 0x18b   :  { %v776_v62 = vpop.eup %775 }
 0x18c   :  { %v227_v63 = vsel %vm226_vm3, %v776_v62, 0.0  ;;  %v235_v0 = vmul.f32 %v776_v62, %v776_v62 }
 0x18d   :  { %v228_v1 = vrot.slane %v227_v63, 4 }
 0x18e   :  { %v236_v2 = vsel %vm226_vm3, %v235_v0, 0.0 }
 0x18f   :  { %v229_v3 = vadd.f32 %v228_v1, %v227_v63  ;;  %v237_v4 = vrot.slane %v236_v2, 4 }
 0x191   :  { %v230_v5 = vrot.slane %v229_v3, 2  ;;  %v238_v6 = vadd.f32 %v237_v4, %v236_v2 }
 0x193   :  { %v231_v7 = vadd.f32 %v230_v5, %v229_v3  ;;  %v239_v8 = vrot.slane %v238_v6, 2 }
 0x195   :  { %v232_v9 = vrot.slane %v231_v7, 1  ;;  %v240_v10 = vadd.f32 %v239_v8, %v238_v6 }
 0x197   :  { %v233_v11 = vadd.f32 %v232_v9, %v231_v7  ;;  %v241_v12 = vrot.slane %v240_v10, 1  ;;  %v510_v7 = vrot.slane %v504_v39, %v259_v28  ;;  %v522_v9 = vrot.slane %v504_v39, %v329_v44 }
 0x199   :  { %v234_v13 = vmul.f32 0.125, %v233_v11  ;;  %v242_v14 = vadd.f32 %v241_v12, %v240_v10  ;;  %v518_v11 = vrot.slane %v504_v39, %v325_v42  ;;  %v505_v12 = vstv %s1208_s8 }
 0x19b   :  { %v243_v15 = vmul.f32 0.125, %v242_v14  ;;  %v244_v16 = vmul.f32 %v234_v13, %v234_v13  ;;  %v249_v30 = vsub.f32 %v776_v62, %v234_v13 }
 0x19d   :  { %v245_v17 = vsub.f32 %v243_v15, %v244_v16 }
 0x19f   :  { %v246_v18 = vmax.f32 %v245_v17, 0.0 }
 0x1a1   :  { %v250_v19 = vadd.f32 1e-05, %v246_v18 }
 0x1a3   :  { %777 = vrcp.f32 %v250_v19 }
 0x1a4   :  { %779 = vrsqrt.f32 %v250_v19 }
 0x1ad   :  { %v778_v21 = vpop.eup %777 }
 0x1ae   :  { %v255_v23 = vmul.f32 %v778_v21, %v246_v18  ;;  %v780_v29 = vpop.eup %779 }
 0x1af   :  { %v252_v31 = vmul.f32 %v780_v29, %v249_v30 }
 0x1b0   :  { %v263_v25 = vmul.f32 %v255_v23, %v253_v22 }
 0x1b1   :  { %v262_v34 = vmul.f32 %v260_v32, %v252_v31 }
 0x1b2   :  { %v264_v26 = vadd.f32 1e-05, %v263_v25 }
 0x1b4   :  { %781 = vrsqrt.f32 %v264_v26 }
 0x1be   :  { %v782_v33 = vpop.eup %781 }
 0x1bf   :  { %v270_v35 = vrot.slane %v782_v33, %v259_v28 }
 0x1c1   :  { %v272_v37 = vmul.f32 %v270_v35, %v262_v34 }
 0x1c3   :  { %v279_v38 = vadd.f32 %v698_v36, %v272_v37 }
 0x1c5   :  { %699 = vmatmul.mubr.msk.f32.vlgmr.msra.gmra.mrb[0].mxu1 %vm226_vm3, %v279_v38  ;;  %700 = vmatmul.mubr.msk.f32.vlgmr.msra.gmra.mrb[2].mxu0 %vm226_vm3, %v279_v38 }
 0x1c6   :  { %591 = vmatprep.mubr.f32.mxu1 %v514_v41 }
 0x298   :  { %v404_v49 = vpop.f32.mrb[0].mxu1  ;;  %v475_v50 = vpop.f32.mrb[2].mxu0 }
 0x299   :  { %v405_v51 = vadd.f32 %v404_v49, %v318_v45  ;;  %v476_v52 = vadd.f32 %v475_v50, %v326_v46  ;;  %v406_v53 = vpop.f32.mrb[1].mxu1  ;;  %v477_v54 = vpop.f32.mrb[3].mxu0 }
 0x29a   :  { %v407_v55 = vadd.f32 %v406_v53, %v322_v47  ;;  %v478_v56 = vadd.f32 %v477_v54, %v330_v48 }
 0x29b   :  { %v701_v57 = vmul.f32 -1.442695, %v405_v51  ;;  %v703_v58 = vmul.f32 -1.442695, %v476_v52 }
 0x29c   :  { %v702_v59 = vmul.f32 -1.442695, %v407_v55  ;;  %v704_v60 = vmul.f32 -1.442695, %v478_v56 }
 0x29d   :  { %783 = vpow2.f32 %v701_v57 }
 0x29e   :  { %785 = vpow2.f32 %v703_v58 }
 0x29f   :  { %787 = vpow2.f32 %v702_v59 }
 0x2a0   :  { %789 = vpow2.f32 %v704_v60 }
 0x2a7   :  { %v784_v61 = vpop.eup %783 }
 0x2a8   :  { %v786_v62 = vpop.eup %785  ;;  %v492_v0 = vadd.f32 1.0, %v784_v61 }
 0x2a9   :  { %v788_v63 = vpop.eup %787  ;;  %v494_v4 = vadd.f32 1.0, %v786_v62 }
 0x2aa   :  { %v790_v1 = vpop.eup %789  ;;  %v493_v2 = vadd.f32 1.0, %v788_v63 }
 0x2ab   :  { %v495_v3 = vadd.f32 1.0, %v790_v1 }
 0x2ac   :  { %791 = vrcp.f32 %v493_v2 }
 0x2ad   :  { %793 = vrcp.f32 %v492_v0 }
 0x2ae   :  { %795 = vrcp.f32 %v495_v3 }
 0x2af   :  { %797 = vrcp.f32 %v494_v4 }
 0x2b6   :  { %v792_v5 = vpop.eup %791 }
 0x2b7   :  { %v794_v6 = vpop.eup %793  ;;  %527 = vmatprep.subr.mxu1 %v792_v5 }
 0x2b8   :  { %v796_v8 = vpop.eup %795  ;;  %528 = vmatpush1.xpose.msra.mxu1 %v794_v6 }
 0x2b9   :  { %597 = vmatprep.subr.mxu1 %v796_v8  ;;  %v798_v10 = vpop.eup %797 }
 0x2bb   :  { %592 = vmatmul.mubr.f32.vlgmr.msra.gmra.mrb[2].mxu1 %v510_v7 }
 0x2bc   :  { %598 = vmatpush1.xpose.msra.mxu1 %v798_v10  ;;  %661 = vmatprep.mubr.f32.mxu1 %v522_v9 }
 0x2c3   :  { %662 = vmatmul.mubr.f32.vlgmr.msra.gmra.mrb[2].mxu1 %v518_v11 }
 0x396   :  { %v663_v13 = vpop.f32.mrb[2].mxu1 }
 0x397   :  { %v754_v14 = vadd.f32 %v663_v13, %v505_v12  ;;  %v665_v15 = vpop.f32.mrb[3].mxu1 }
 0x399   :  { %v705_v16 = vmul.f32 -1.442695, %v754_v14 }
 0x39b   :  { %799 = vpow2.f32 %v705_v16 }
 0x3a5   :  { %v800_v17 = vpop.eup %799 }
 0x3a6   :  { %v670_v18 = vadd.f32 1.0, %v800_v17 }
 0x3a8   :  { %801 = vrcp.f32 %v670_v18 }
 0x3b2   :  { %v802_v19 = vpop.eup %801 }
 0x3b3   :  { %674 = vst.msk [vmem:[#allocation17] sm:$0x1] %vm673_vm4, %v802_v19 }
 0x3b4   :  { %990 = shalt.err (!%p987_p12)
}
 0x3b5   :  { %s991_s18 = scalar_lea.hbm %s1209_s9, 16 }
 0x3b6   :  { %p992_p13 = scmp.ne.s32.totalorder %s1209_s9, %s991_s18  ;;  %p995_p0 = scmp.lt.u32.totalorder %s991_s18, %s1209_s9 }
 0x3b8   :  { %p997_p1 = pnand %p995_p0, %p992_p13 }
 0x3ba   :  { %1000 = shalt.err (!%p997_p1)
}
 0x3bb   :  { %684 = dma.vmem_to_hbm [thread:$0]  %s682_s2, 16, %s1209_s9, [#allocation5]  }
 0x3bc   :  { %1011 = dma.done.wait [#allocation5], 16  }
 0x3bd   :  { %1012 = vsyncadd [#allocation5], 4294967280 }
 0x3be   :  { %688 = vsyncpa [#allocation4], 1 }
 0x3bf   :  { %689 = vsyncpa [#allocation7], 1 }
 0x3c0   :  { %690 = vsyncpa [#allocation10], 1 }
 0x3c1   :  { %691 = vsyncpa [#allocation13], 1 }
 0x3c2   :  { %692 = vsyncpa [#allocation16], 1 }
 0x3c3   :  { %693 = vsyncpa [#allocation5], 1 }

</bundles_post_ra>
